<compile_context>
chip_gen: v6e
topology: v6e:2x2x1
jax: 0.10.0
libtpu: 0.0.40
codegen_flags: <defaults>
</compile_context>

<pallas_src>
import functools

import jax
import jax.numpy as jnp
from jax.experimental import pallas as pl
from jax.experimental.pallas import tpu as pltpu

LN_EPS = 1e-5                      # PyTorch nn.LayerNorm default
INV_SQRT2 = 0.7071067811865476     # 1/sqrt(2) for exact (erf) GELU


def _incheck_head_kernel(xT_ref, w1t_ref, b1_ref, w2_ref, o_ref, *, approximate):
    # xT_ref: (D, tm) batch-on-lanes tile; w1t_ref: (D, D) = (gamma*W1)^T;
    # b1_ref: (D, 1) folded bias column; w2_ref: (1, D); o_ref: (1, tm) lane-dense logits row.
    x = xT_ref[...].astype(jnp.float32)                                   # (D, tm)
    d = x.shape[0]

    # Fused LayerNorm statistics: mean and mean-of-squares in one pass over the data,
    # with the D-reduction done on the (idle) MXU instead of the saturated VALU/XLU.
    ones_row = jnp.full((1, d), 1.0 / d, dtype=jnp.float32)
    mu = jnp.dot(ones_row, x, preferred_element_type=jnp.float32)         # (1, tm)
    ex2 = jnp.dot(ones_row, x * x, preferred_element_type=jnp.float32)    # (1, tm)
    var = jnp.maximum(ex2 - mu * mu, 0.0)
    r = jax.lax.rsqrt(var + LN_EPS)                                       # (1, tm)

    # Normalize (affine already folded into W1/b1 by the wrapper); full-lane VPU work.
    xn = (x - mu) * r                                                     # (D, tm)

    # Linear(D, D), transposed: h^T = (gamma*W1)^T @ xn^T, f32 MXU accumulate.
    h = jnp.dot(w1t_ref[...], xn, preferred_element_type=jnp.float32) + b1_ref[...]

    # GELU: tanh approximation (EUP slot) by default; exact erf kept for bit-faithful torch match.
    if approximate:
        h = jax.nn.gelu(h, approximate=True)
    else:
        h = 0.5 * h * (1.0 + jax.lax.erf(h * INV_SQRT2))

    # Linear(D, 1): (1, D) @ (D, tm) -> (1, tm) on the MXU; layout-native lane-dense store.
    o_ref[...] = jnp.dot(w2_ref[...], h, preferred_element_type=jnp.float32).astype(o_ref.dtype)


def _round_up(a, m):
    return ((a + m - 1) // m) * m


def incheck_head(x, gamma, beta, w1, b1, w2, b2, *, tm=8192, approximate_gelu=True):
    """x: (B, D) -> f32 logits (B,). w1/w2 use (in, out) layout (already transposed from torch)."""
    B, D = x.shape
    f32 = jnp.float32
    gamma = gamma.reshape(-1).astype(f32)        # (D,)
    beta = beta.reshape(-1).astype(f32)          # (D,)
    b1 = b1.reshape(-1).astype(f32)              # (D,)
    w2 = w2.reshape(-1).astype(f32)              # (D,)
    w1 = w1.astype(f32)                          # (D_in, D_out)

    # Fold the LayerNorm affine into the first Linear (exact algebra):
    #   (norm(x)*g + b) @ W1 + b1 == norm(x) @ (g[:,None]*W1) + (b @ W1 + b1)
    # and keep the parameters in the transposed layout used by the kernel.
    w1t = (gamma[:, None] * w1).T                # (D_out, D_in) = (gamma*W1)^T
    b1col = (b1 + beta @ w1).reshape(D, 1)       # folded bias as a (D, 1) column
    w2row = w2.reshape(1, D)

    # Batch on the 128-lane axis: feed x^T tiles of shape (D, tm). (One-time XLA transpose;
    # cheap vs. the previously VALU-bound kernel and avoids per-tile XLU transposes.)
    xT = x.T                                     # (D, B), original dtype (cast in-kernel)

    # Tile selection: lane-dim multiples of 128; >=2 grid steps whenever possible so
    # dimension_semantics=("parallel",) can shard the batch across both v7x TensorCores.
    if B <= 128:
        tm_eff = B                               # single full-extent block (masked store OK at tiny B)
    else:
        tm_eff = min(tm, _round_up(pl.cdiv(B, 2), 128))
    # VMEM guard for future D growth: x^T tile (double-buffered) + f32 intermediates must stay
    # well under the v7x 32 MiB scoped default. At D=32 this never binds.
    per_col_bytes = D * 4 * 6
    max_tm = max(128, ((16 * 1024 * 1024) // per_col_bytes) // 128 * 128)
    tm_eff = min(tm_eff, max_tm)
    grid = pl.cdiv(B, tm_eff)                    # partial last block: Pallas masks it (no full-array pad)

    kernel = functools.partial(_incheck_head_kernel, approximate=approximate_gelu)

    out = pl.pallas_call(
        kernel,
        out_shape=jax.ShapeDtypeStruct((1, B), f32),
        grid_spec=pltpu.PrefetchScalarGridSpec(
            num_scalar_prefetch=0,
            grid=(grid,),
            in_specs=[
                pl.BlockSpec((D, tm_eff), lambda i: (0, i)),   # x^T tile (batch on lanes)
                pl.BlockSpec((D, D), lambda i: (0, 0)),        # (gamma*W1)^T (grid-invariant, stays resident)
                pl.BlockSpec((D, 1), lambda i: (0, 0)),        # folded b1 column
                pl.BlockSpec((1, D), lambda i: (0, 0)),        # w2 row
            ],
            out_specs=pl.BlockSpec((1, tm_eff), lambda i: (0, i)),   # lane-dense logits row
        ),
        compiler_params=pltpu.CompilerParams(dimension_semantics=("parallel",)),
    )(xT, w1t, b1col, w2row)

    # Final scalar bias added in the wrapper (tiny; avoids a padded (1,1) stream in the kernel).
    return out[0, :] + jnp.asarray(b2, f32).reshape(())


def reference(x, gamma, beta, w1, b1, w2, b2, *, approximate):
    xf = x.astype(jnp.float32)
    mu = jnp.mean(xf, axis=-1, keepdims=True)
    var = jnp.mean((xf - mu) ** 2, axis=-1, keepdims=True)
    xn = (xf - mu) / jnp.sqrt(var + LN_EPS) * gamma + beta
    h = xn @ w1 + b1
    h = jax.nn.gelu(h, approximate=approximate)
    return (h @ w2.reshape(-1, 1))[:, 0] + jnp.asarray(b2, jnp.float32).reshape(())


if __name__ == "__main__":
    B, D = 8, 32  # small batch of king-square representations, embed_dim
    key = jax.random.PRNGKey(0)
    kx, kg, kb, k1, k2, k3, k4 = jax.random.split(key, 7)

    x = jax.random.normal(kx, (B, D), dtype=jnp.float32)

    # Deterministic synthetic parameters (shapes implied by InCheckHead.__init__).
    gamma = 1.0 + 0.1 * jax.random.normal(kg, (D,), dtype=jnp.float32)
    beta = 0.1 * jax.random.normal(kb, (D,), dtype=jnp.float32)
    w1 = jax.random.normal(k1, (D, D), dtype=jnp.float32) * (1.0 / jnp.sqrt(D))
    b1 = 0.01 * jax.random.normal(k2, (D,), dtype=jnp.float32)
    w2 = jax.random.normal(k3, (D,), dtype=jnp.float32) * (1.0 / jnp.sqrt(D))
    b2 = 0.01 * jax.random.normal(k4, (), dtype=jnp.float32)

    # 1) Default path: tanh-GELU (EUP), single full-extent block for tiny B.
    out = incheck_head(x, gamma, beta, w1, b1, w2, b2)
    jax.block_until_ready(out)
    ref_tanh = reference(x, gamma, beta, w1, b1, w2, b2, approximate=True)
    assert out.shape == (B,)
    assert jnp.allclose(out, ref_tanh, atol=1e-4, rtol=1e-4), (out, ref_tanh)

    # 2) Exact-erf path matches torch.nn.GELU's default semantics.
    out_exact = incheck_head(x, gamma, beta, w1, b1, w2, b2, approximate_gelu=False)
    jax.block_until_ready(out_exact)
    ref_erf = reference(x, gamma, beta, w1, b1, w2, b2, approximate=False)
    assert jnp.allclose(out_exact, ref_erf, atol=1e-4, rtol=1e-4), (out_exact, ref_erf)

    # 3) Multi-step grid with a partial (masked) last block, small tile.
    B2 = 300
    x2 = jax.random.normal(kx, (B2, D), dtype=jnp.float32)
    out2 = incheck_head(x2, gamma, beta, w1, b1, w2, b2, tm=128)
    jax.block_until_ready(out2)
    ref2 = reference(x2, gamma, beta, w1, b1, w2, b2, approximate=True)
    assert out2.shape == (B2,)
    assert jnp.allclose(out2, ref2, atol=1e-4, rtol=1e-4), (out2, ref2)

    # 4) Default tm with B > 128: tile capped at round_up(B/2, 128) -> 2 parallel grid steps.
    out3 = incheck_head(x2, gamma, beta, w1, b1, w2, b2)
    jax.block_until_ready(out3)
    assert jnp.allclose(out3, ref2, atol=1e-4, rtol=1e-4), (out3, ref2)

    print("KERNEL_OK")
</pallas_src>

<mosaic_0001>
module attributes {stable_mosaic.version = 11 : i64} {
  func.func @_incheck_head_kernel(%arg0: i32, %arg1: memref<32x8xf32, #tpu.memory_space<vmem>>, %arg2: memref<32x32xf32, #tpu.memory_space<vmem>>, %arg3: memref<32x1xf32, #tpu.memory_space<vmem>>, %arg4: memref<1x32xf32, #tpu.memory_space<vmem>>, %arg5: memref<1x8xf32, #tpu.memory_space<vmem>>) attributes {dimension_semantics = [#tpu.dimension_semantics<parallel>], iteration_bounds = array<i64: 1>, scalar_prefetch = 0 : i64, scratch_operands = 0 : i64, tpu.core_type = #tpu.core_type<tc>, window_params = [{transform_indices = @transform_0, window_bounds = array<i64: 32, 8>}, {pipeline_mode = #tpu.pipeline_mode<synchronous>, transform_indices = @transform_1, window_bounds = array<i64: 32, 32>}, {pipeline_mode = #tpu.pipeline_mode<synchronous>, transform_indices = @transform_2, window_bounds = array<i64: 32, 1>}, {pipeline_mode = #tpu.pipeline_mode<synchronous>, transform_indices = @transform_3, window_bounds = array<i64: 1, 32>}, {transform_indices = @transform_4, window_bounds = array<i64: 1, 8>}]} {
    %c0 = arith.constant 0 : index
    %c0_0 = arith.constant 0 : index
    %0 = vector.load %arg1[%c0, %c0_0] : memref<32x8xf32, #tpu.memory_space<vmem>>, vector<32x8xf32>
    %cst = arith.constant 3.125000e-02 : f32
    %1 = vector.broadcast %cst : f32 to vector<1x32xf32>
    %cst_1 = arith.constant dense<0.000000e+00> : vector<1x8xf32>
    %2 = tpu.matmul %1, %0, %cst_1 {dimension_numbers = #tpu.dot_dimension_numbers<[1], [0], [0], [1], [0, 0, 1, 1], [], []>} : vector<1x32xf32>, vector<32x8xf32>, vector<1x8xf32> -> vector<1x8xf32>
    %3 = arith.mulf %0, %0 : vector<32x8xf32>
    %cst_2 = arith.constant dense<0.000000e+00> : vector<1x8xf32>
    %4 = tpu.matmul %1, %3, %cst_2 {dimension_numbers = #tpu.dot_dimension_numbers<[1], [0], [0], [1], [0, 0, 1, 1], [], []>} : vector<1x32xf32>, vector<32x8xf32>, vector<1x8xf32> -> vector<1x8xf32>
    %5 = arith.mulf %2, %2 : vector<1x8xf32>
    %6 = arith.subf %4, %5 : vector<1x8xf32>
    %cst_3 = arith.constant 0.000000e+00 : f32
    %7 = vector.broadcast %cst_3 : f32 to vector<1x8xf32>
    %8 = arith.maximumf %6, %7 : vector<1x8xf32>
    %cst_4 = arith.constant 9.99999974E-6 : f32
    %9 = vector.broadcast %cst_4 : f32 to vector<1x8xf32>
    %10 = arith.addf %8, %9 : vector<1x8xf32>
    %11 = math.rsqrt %10 : vector<1x8xf32>
    %12 = vector.broadcast %2 : vector<1x8xf32> to vector<32x8xf32>
    %13 = arith.subf %0, %12 : vector<32x8xf32>
    %14 = vector.broadcast %11 : vector<1x8xf32> to vector<32x8xf32>
    %15 = arith.mulf %13, %14 : vector<32x8xf32>
    %c0_5 = arith.constant 0 : index
    %c0_6 = arith.constant 0 : index
    %16 = vector.load %arg2[%c0_5, %c0_6] : memref<32x32xf32, #tpu.memory_space<vmem>>, vector<32x32xf32>
    %cst_7 = arith.constant dense<0.000000e+00> : vector<32x8xf32>
    %17 = tpu.matmul %16, %15, %cst_7 {dimension_numbers = #tpu.dot_dimension_numbers<[1], [0], [0], [1], [0, 0, 1, 1], [], []>} : vector<32x32xf32>, vector<32x8xf32>, vector<32x8xf32> -> vector<32x8xf32>
    %c0_8 = arith.constant 0 : index
    %c0_9 = arith.constant 0 : index
    %18 = vector.load %arg3[%c0_8, %c0_9] : memref<32x1xf32, #tpu.memory_space<vmem>>, vector<32x1xf32>
    %19 = vector.broadcast %18 : vector<32x1xf32> to vector<32x8xf32>
    %20 = arith.addf %17, %19 : vector<32x8xf32>
    %21 = arith.mulf %20, %20 : vector<32x8xf32>
    %22 = arith.mulf %20, %21 : vector<32x8xf32>
    %cst_10 = arith.constant 4.471500e-02 : f32
    %23 = vector.broadcast %cst_10 : f32 to vector<32x8xf32>
    %24 = arith.mulf %23, %22 : vector<32x8xf32>
    %25 = arith.addf %20, %24 : vector<32x8xf32>
    %cst_11 = arith.constant 0.797884583 : f32
    %26 = vector.broadcast %cst_11 : f32 to vector<32x8xf32>
    %27 = arith.mulf %26, %25 : vector<32x8xf32>
    %28 = math.tanh %27 : vector<32x8xf32>
    %cst_12 = arith.constant 1.000000e+00 : f32
    %29 = vector.broadcast %cst_12 : f32 to vector<32x8xf32>
    %30 = arith.addf %29, %28 : vector<32x8xf32>
    %cst_13 = arith.constant 5.000000e-01 : f32
    %31 = vector.broadcast %cst_13 : f32 to vector<32x8xf32>
    %32 = arith.mulf %31, %30 : vector<32x8xf32>
    %33 = arith.mulf %20, %32 : vector<32x8xf32>
    %c0_14 = arith.constant 0 : index
    %c0_15 = arith.constant 0 : index
    %34 = vector.load %arg4[%c0_14, %c0_15] : memref<1x32xf32, #tpu.memory_space<vmem>>, vector<1x32xf32>
    %cst_16 = arith.constant dense<0.000000e+00> : vector<1x8xf32>
    %35 = tpu.matmul %34, %33, %cst_16 {dimension_numbers = #tpu.dot_dimension_numbers<[1], [0], [0], [1], [0, 0, 1, 1], [], []>} : vector<1x32xf32>, vector<32x8xf32>, vector<1x8xf32> -> vector<1x8xf32>
    %c0_17 = arith.constant 0 : index
    %c0_18 = arith.constant 0 : index
    %36 = vector.load %arg5[%c0_17, %c0_18] : memref<1x8xf32, #tpu.memory_space<vmem>>, vector<1x8xf32>
    tpu.vector_store %arg5[%c0_17, %c0_18], %35 {strides = array<i32>} : memref<1x8xf32, #tpu.memory_space<vmem>>, vector<1x8xf32>,
    return
  }
  func.func @transform_0(%arg0: i32) -> (i32, i32) {
    %c0_i32 = arith.constant 0 : i32
    %c0_i32_0 = arith.constant 0 : i32
    return %c0_i32, %arg0 : i32, i32
  }
  func.func @transform_1(%arg0: i32) -> (i32, i32) {
    %c0_i32 = arith.constant 0 : i32
    %c0_i32_0 = arith.constant 0 : i32
    %c0_i32_1 = arith.constant 0 : i32
    return %c0_i32, %c0_i32_0 : i32, i32
  }
  func.func @transform_2(%arg0: i32) -> (i32, i32) {
    %c0_i32 = arith.constant 0 : i32
    %c0_i32_0 = arith.constant 0 : i32
    %c0_i32_1 = arith.constant 0 : i32
    return %c0_i32, %c0_i32_0 : i32, i32
  }
  func.func @transform_3(%arg0: i32) -> (i32, i32) {
    %c0_i32 = arith.constant 0 : i32
    %c0_i32_0 = arith.constant 0 : i32
    %c0_i32_1 = arith.constant 0 : i32
    return %c0_i32, %c0_i32_0 : i32, i32
  }
  func.func @transform_4(%arg0: i32) -> (i32, i32) {
    %c0_i32 = arith.constant 0 : i32
    %c0_i32_0 = arith.constant 0 : i32
    return %c0_i32, %arg0 : i32, i32
  }
}

</mosaic_0001>

<bundles_post_ra>
// kernel: tpu_custom_call.1
= control target key start
LH: loop header
LB: loop body
LE: loop exit
PB: predicated region body
PF: predicated region fallthrough
CT: control target
= control target key end

     0   :  { %v558_v3 = vmov 0.0   ;;  %s679_s0 = inlined_call_operand.vmem [shape: f32[32,8], index: 0, kind: input, shape index: {}]   ;;  %s680_s1 = inlined_call_operand.vmem [shape: f32[32,32], index: 1, kind: input, shape index: {}]   ;;  %s681_s2 = inlined_call_operand.vmem [shape: f32[32,1], index: 2, kind: input, shape index: {}]   ;;  %s682_s3 = inlined_call_operand.vmem [shape: f32[1,32], index: 3, kind: input, shape index: {}]   ;;  %s683_s4 = inlined_call_operand.hbm [shape: f32[1,8], index: 4, kind: output, shape index: {}]  }
   0x1   :  { %v591_v0 = vld [vmem:[%s679_s0 + $0x18] sm:$0xff]  ;;  %v596_v1 = vld [vmem:[%s679_s0 + $0x10] sm:$0xff]  ;;  %v601_v2 = vld [vmem:[%s679_s0 + $0x8] sm:$0xff]  ;;  %472 = vmatprep.subr.mxu0 %v558_v3  ;;  %483 = vmatprep.subr.mxu1 %v558_v3 }
   0x2   :  { %v99_v4 = vmul.f32 %v591_v0, %v591_v0  ;;  %v98_v5 = vmul.f32 %v596_v1, %v596_v1 }
   0x3   :  { %9 = vsyncpa [#allocation3], 0  ;;  %473 = vmatpush3.msra.mxu0 %v591_v0  ;;  %v613_v6 = vld [vmem:[%s679_s0] sm:$0xff]  ;;  %vm559_vm0 = vmmov 0   ;;  %v97_v7 = vmul.f32 %v601_v2, %v601_v2  ;;  %vm22_vm1 = vcmask 261120   ;;  %v560_v9 = vmov 0.03125  }
   0x4   :  { %480 = vmatprep.mubr.msk.f32.mxu0 %vm559_vm0, %v558_v3  ;;  %474 = vmatprep.subr.mxu0 %v558_v3  ;;  %v96_v8 = vmul.f32 %v613_v6, %v613_v6  ;;  %v191_v10 = vld [vmem:[%s680_s1] sm:$0xff]  ;;  %v198_v11 = vld [vmem:[%s681_s2 + $0x18] sm:$0xff]  ;;  %v196_v12 = vld [vmem:[%s681_s2 + $0x8] sm:$0xff]  ;;  %v561_v13 = vmov 0   ;;  %v175_v23 = vlaneseq  ;;  %s562_s12 = smov [#allocation2]   ;;  %vm426_vm2 = vcmask 57344  }
   0x5   :  { %484 = vmatpush3.msra.mxu1 %v99_v4  ;;  %475 = vmatpush3.msra.mxu0 %v596_v1  ;;  %v197_v14 = vld [vmem:[%s681_s2 + $0x10] sm:$0xff]  ;;  %v195_v15 = vld [vmem:[%s681_s2] sm:$0xff]  ;;  %v192_v38 = vld [vmem:[%s680_s1 + $0x8] sm:$0xff]  ;;  %s434_s13 = sshll.u32 %s562_s12, 4  ;;  %s435_s13 = int_to_ptr.vmem [resolvable:$true] %s434_s13 }
   0x6   :  { %485 = vmatprep.subr.mxu1 %v558_v3  ;;  %476 = vmatprep.subr.mxu0 %v558_v3  ;;  %v176_v25 = vshrl.u32 %v175_v23, 7  ;;  %v193_v39 = vld [vmem:[%s680_s1 + $0x10] sm:$0xff]  ;;  %v194_v40 = vld [vmem:[%s680_s1 + $0x18] sm:$0xff]  ;;  %s536_s14 = scalar_lea.vmem %s435_s13, 16  ;;  %s540_s15 = scalar_lea.vmem %s435_s13, 32 }
   0x7   :  { %486 = vmatpush3.msra.mxu1 %v98_v5  ;;  %477 = vmatpush3.msra.mxu0 %v601_v2  ;;  %p537_p0 = scmp.ne.s32.totalorder %s435_s13, %s536_s14  ;;  %p541_p1 = scmp.lt.s32.totalorder %s435_s13, %s435_s13 }
   0x8   :  { %487 = vmatprep.subr.mxu1 %v558_v3  ;;  %478 = vmatprep.subr.mxu0 %v558_v3  ;;  %v177_v26 = vsub.s32 0, %v176_v25  ;;  %p542_p2 = scmp.lt.s32.totalorder %s540_s15, %s536_s14 }
   0x9   :  { %488 = vmatpush3.msra.mxu1 %v97_v7  ;;  %479 = vmatpush3.msra.mxu0 %v613_v6 }
   0xa   :  { %489 = vmatprep.subr.mxu1 %v558_v3  ;;  %481 = vmatmul.mubr.msk.f32.vlgmr.msra.gmra.mxu0 %vm22_vm1, %v560_v9  ;;  %p543_p3 = por %p542_p2, %p541_p1 }
   0xb   :  { %490 = vmatpush3.msra.mxu1 %v96_v8  ;;  %491 = vmatprep.mubr.msk.f32.mxu1 %vm559_vm0, %v558_v3 }
   0xc   :  { %508 = vmatprep.subr.mxu1 %v558_v3  ;;  %492 = vmatmul.mubr.msk.f32.vlgmr.msra.gmra.mxu1 %vm22_vm1, %v560_v9  ;;  %p544_p4 = pnand %p543_p3, %p537_p0 }
   0xd   :  { %516 = vmatprep.mubr.msk.f32.mxu1 %vm559_vm0, %v558_v3  ;;  %502 = vmatprep.mubr.msk.f32.mxu0 %vm22_vm1, %v191_v10 }
   0xe   :  { %525 = vset.pattern.permute.xlu1 %v561_v13  ;;  %524 = vset.pattern.permute.xlu0 %v561_v13 }
   0xf   :  { %216 = vperm.xlu0 %524, %v198_v11   ;;  %206 = vperm.xlu1 %525, %v196_v12  }
  0x13   :  { %211 = vperm.xlu0 %524, %v197_v14   ;;  %201 = vperm.xlu1 %525, %v195_v15  }
  0x8a   :  { %v207_v41 = vpop.permute.xlu1 %206  ;;  %v217_v42 = vpop.permute.xlu0 %216 }
  0x8e   :  { %v202_v44 = vpop.permute.xlu1 %201  ;;  %v212_v53 = vpop.permute.xlu0 %211 }
  0xca   :  { %v92_v16 = vpop.f32.mrf.mxu0 }
  0xcb   :  { %v170_v17 = vmul.f32 %v92_v16, %v92_v16  ;;  %v178_v27 = vrot.slane %v92_v16, %v177_v26 }
  0xcc   :  { %v166_v18 = vpop.f32.mrf.mxu1  ;;  %v482_v19 = vpop.f32.mrf.mxu0 }
  0xcd   :  { %v171_v20 = vsub.f32 %v166_v18, %v170_v17  ;;  %v182_v29 = vsub.f32 %v591_v0, %v178_v27  ;;  %v181_v32 = vsub.f32 %v596_v1, %v178_v27  ;;  %v180_v34 = vsub.f32 %v601_v2, %v178_v27 }
  0xce   :  { %v493_v21 = vpop.f32.mrf.mxu1  ;;  %v179_v36 = vsub.f32 %v613_v6, %v178_v27 }
  0xcf   :  { %v172_v22 = vmax.f32 %v171_v20, 0.0 }
  0xd1   :  { %v173_v24 = vadd.f32 1e-05, %v172_v22 }
  0xd3   :  { %526 = vrsqrt.f32 %v173_v24 }
  0xe0   :  { %v527_v28 = vpop.eup %526 }
  0xe1   :  { %v186_v30 = vrot.slane %v527_v28, %v177_v26  ;;  %v352_v26 = vld [vmem:[%s682_s3] sm:$0x1] }
  0xe3   :  { %v190_v31 = vmul.f32 %v186_v30, %v182_v29  ;;  %v189_v33 = vmul.f32 %v186_v30, %v181_v32  ;;  %v188_v35 = vmul.f32 %v186_v30, %v180_v34  ;;  %v187_v37 = vmul.f32 %v186_v30, %v179_v36 }
  0xe5   :  { %494 = vmatprep.subr.mxu0 %v190_v31 }
  0xe6   :  { %495 = vmatpush3.msra.mxu0 %v190_v31 }
  0xe7   :  { %496 = vmatprep.subr.mxu0 %v189_v33 }
  0xe8   :  { %497 = vmatpush3.msra.mxu0 %v189_v33 }
  0xe9   :  { %498 = vmatprep.subr.mxu0 %v188_v35 }
  0xea   :  { %499 = vmatpush3.msra.mxu0 %v188_v35 }
  0xeb   :  { %500 = vmatprep.subr.mxu0 %v187_v37 }
  0xec   :  { %501 = vmatpush3.msra.mxu0 %v187_v37 }
  0xed   :  { %503 = vmatmul.mubr.msk.f32.vlgmr.msra.gmra.mxu0 %vm22_vm1, %v192_v38 }
  0xee   :  { %505 = vmatprep.mubr.msk.f32.mxu0 %vm22_vm1, %v193_v39 }
  0xf1   :  { %506 = vmatmul.mubr.msk.f32.gmra.mxu0 %vm22_vm1, %v194_v40 }
 0x1ad   :  { %v504_v43 = vpop.f32.mrf.mxu0 }
 0x1ae   :  { %v303_v45 = vadd.f32 %v504_v43, %v207_v41 }
 0x1af   :  { %v297_v46 = vpop.f32.mrf.mxu0 }
 0x1b0   :  { %v317_v47 = vmul.f32 %v303_v45, %v303_v45  ;;  %v298_v48 = vadd.f32 %v297_v46, %v202_v44 }
 0x1b1   :  { %v507_v49 = vpop.f32.mrf.mxu0 }
 0x1b2   :  { %v321_v50 = vmul.f32 %v317_v47, %v303_v45  ;;  %v316_v51 = vmul.f32 %v298_v48, %v298_v48  ;;  %v313_v52 = vadd.f32 %v507_v49, %v217_v42 }
 0x1b3   :  { %v307_v54 = vpop.f32.mrf.mxu0 }
 0x1b4   :  { %v325_v55 = vmul.f32 0.044715, %v321_v50  ;;  %v320_v56 = vmul.f32 %v316_v51, %v298_v48  ;;  %v319_v57 = vmul.f32 %v313_v52, %v313_v52  ;;  %v308_v58 = vadd.f32 %v307_v54, %v212_v53 }
 0x1b6   :  { %v329_v59 = vadd.f32 %v325_v55, %v303_v45  ;;  %v324_v60 = vmul.f32 0.044715, %v320_v56  ;;  %v323_v61 = vmul.f32 %v319_v57, %v313_v52  ;;  %v318_v62 = vmul.f32 %v308_v58, %v308_v58 }
 0x1b8   :  { %v333_v63 = vmul.f32 0.7978846, %v329_v59  ;;  %v328_v0 = vadd.f32 %v324_v60, %v298_v48  ;;  %v327_v1 = vmul.f32 0.044715, %v323_v61  ;;  %v322_v2 = vmul.f32 %v318_v62, %v308_v58 }
 0x1ba   :  { %v332_v4 = vmul.f32 0.7978846, %v328_v0  ;;  %v331_v5 = vadd.f32 %v327_v1, %v313_v52  ;;  %v326_v6 = vmul.f32 0.044715, %v322_v2  ;;  %528 = vtanh.f32 %v333_v63 }
 0x1bc   :  { %v335_v7 = vmul.f32 0.7978846, %v331_v5  ;;  %v330_v8 = vadd.f32 %v326_v6, %v308_v58  ;;  %530 = vtanh.f32 %v332_v4 }
 0x1be   :  { %532 = vtanh.f32 %v335_v7  ;;  %v334_v9 = vmul.f32 0.7978846, %v330_v8 }
 0x1c0   :  { %534 = vtanh.f32 %v334_v9 }
 0x1c7   :  { %v529_v10 = vpop.eup %528 }
 0x1c8   :  { %v341_v14 = vadd.f32 1.0, %v529_v10 }
 0x1c9   :  { %v531_v11 = vpop.eup %530 }
 0x1ca   :  { %v340_v18 = vadd.f32 1.0, %v531_v11  ;;  %v345_v21 = vmul.f32 0.5, %v341_v14 }
 0x1cb   :  { %v533_v12 = vpop.eup %532 }
 0x1cc   :  { %v343_v13 = vadd.f32 1.0, %v533_v12  ;;  %v344_v23 = vmul.f32 0.5, %v340_v18  ;;  %v349_v24 = vmul.f32 %v345_v21, %v303_v45 }
 0x1cd   :  { %v535_v15 = vpop.eup %534 }
 0x1ce   :  { %v347_v16 = vmul.f32 0.5, %v343_v13  ;;  %v342_v17 = vadd.f32 1.0, %v535_v15  ;;  %v348_v25 = vmul.f32 %v344_v23, %v298_v48 }
 0x1d0   :  { %v351_v19 = vmul.f32 %v347_v16, %v313_v52  ;;  %v346_v20 = vmul.f32 0.5, %v342_v17 }
 0x1d2   :  { %509 = vmatpush3.msra.mxu1 %v351_v19  ;;  %v350_v22 = vmul.f32 %v346_v20, %v308_v58 }
 0x1d3   :  { %510 = vmatprep.subr.mxu1 %v558_v3 }
 0x1d4   :  { %511 = vmatpush3.msra.mxu1 %v350_v22 }
 0x1d5   :  { %512 = vmatprep.subr.mxu1 %v558_v3 }
 0x1d6   :  { %513 = vmatpush3.msra.mxu1 %v349_v24 }
 0x1d7   :  { %514 = vmatprep.subr.mxu1 %v558_v3 }
 0x1d8   :  { %515 = vmatpush3.msra.mxu1 %v348_v25 }
 0x1d9   :  { %517 = vmatmul.mubr.msk.f32.vlgmr.msra.gmra.mxu1 %vm22_vm1, %v352_v26 }
 0x299   :  { %v422_v27 = vpop.f32.mrf.mxu1 }
 0x29a   :  { %427 = vst.msk [vmem:[#allocation2] sm:$0x1] %vm426_vm2, %v422_v27 }
 0x29b   :  { %v518_v28 = vpop.f32.mrf.mxu1 }
 0x29c   :  { %547 = shalt.err (!%p544_p4)
}
 0x29d   :  { %437 = dma.vmem_to_hbm [thread:$0]  %s435_s13, 16, %s683_s4, [#allocation3]  }
 0x29e   :  { %556 = dma.done.wait [#allocation3], 16  }
 0x29f   :  { %557 = vsyncadd [#allocation3], 4294967280 }
 0x2a0   :  { %441 = vsyncpa [#allocation3], 1 }

</bundles_post_ra>
